<compile_context>
chip_gen: v6e
topology: v6e:2x2x1
jax: 0.10.0
libtpu: 0.0.40
codegen_flags: <defaults>
</compile_context>

<pallas_src>
import functools

import jax
import jax.numpy as jnp
from jax.experimental import pallas as pl
from jax.experimental.pallas import tpu as pltpu


_LANES = 128
_MAX_TILE_B = 128 * 1024   # keeps double-buffered VMEM ~16 MiB (v7x: 64 MiB physical)


def _round_up(x, m):
    return ((x + m - 1) // m) * m


def _cdiv(a, b):
    return (a + b - 1) // b


def _choose_tiling(batch, block_batch):
    """Pick the lane-tile size and grid for the batch axis.

    - tile is a multiple of 128 lanes and capped so VMEM fits every generation
    - large default tile so per-step DMA dwarfs the ~0.35us grid-step overhead
    - >= 2 (preferably even) grid steps whenever the batch spans more than one
      128-lane tile, so both v7x TensorCores get work ("parallel" grid axis)
    """
    bp = _round_up(batch, _LANES)
    tb = min(_round_up(min(int(block_batch), _MAX_TILE_B), _LANES), bp)
    g = _cdiv(bp, tb)
    if g == 1 and bp >= 2 * _LANES:
        g = 2                      # split so both v7x TCs get a tile
    elif g > 1 and g % 2 == 1:
        g += 1                     # even grid for 2-TC sharding
    tb = _round_up(_cdiv(bp, g), _LANES)
    if batch >= tb:
        arr_lanes = batch          # ragged last block handled by the in-kernel mask
    else:
        arr_lanes = tb             # tiny batch (< one lane tile): pad <=127 lanes
    grid = _cdiv(arr_lanes, tb)
    return tb, arr_lanes, grid


def _class_weighted_loss_kernel(pred_ref, tgt_ref, cw_ref, out_ref, *,
                                num_classes, smoothing, batch, tile_b):
    # pred_ref: [C, TB] (f32/bf16)   tgt_ref: [1, TB] int (any width)
    # cw_ref:   [C, 1]  f32          out_ref: [1, 128] f32 (partial sum in lane 0)
    logits = pred_ref[...].astype(jnp.float32)                      # [C, TB]
    C, TB = logits.shape

    # numerically-stable log-softmax pieces; class reductions are sublane sums
    m = jnp.max(logits, axis=0, keepdims=True)                      # [1, TB]
    shifted = logits - m                                            # [C, TB]
    lse = jnp.log(jnp.sum(jnp.exp(shifted), axis=0, keepdims=True)) # [1, TB]

    # one compare drives both "gathers": logp[tgt] and class_weights[tgt]
    tgt = tgt_ref[...].astype(jnp.int32)                            # [1, TB]
    row = jax.lax.broadcasted_iota(jnp.int32, (C, TB), 0)
    is_tgt = row == tgt                                             # [C, TB]
    shifted_tgt = jnp.sum(jnp.where(is_tgt, shifted, 0.0), axis=0, keepdims=True)
    w = jnp.sum(jnp.where(is_tgt, cw_ref[...], 0.0), axis=0, keepdims=True)

    # sum_c log_softmax = sum_c shifted - C*lse ; logp_tgt = shifted_tgt - lse
    sum_logp = jnp.sum(shifted, axis=0, keepdims=True) - jnp.float32(num_classes) * lse
    logp_tgt = shifted_tgt - lse

    off = smoothing / (num_classes - 1)
    loss = -(1.0 - smoothing - off) * logp_tgt - off * sum_logp     # [1, TB]
    weighted = loss * w

    # mask lanes past the true batch (ragged / padded last tile) BEFORE the reduce
    lane = jax.lax.broadcasted_iota(jnp.int32, (1, TB), 1)
    gidx = pl.program_id(0) * tile_b + lane
    weighted = jnp.where(gidx < batch, weighted, 0.0)

    # per-tile partial sum -> lane 0 of this tile's [1, 128] output slab
    partial = jnp.sum(weighted)
    out_lane = jax.lax.broadcasted_iota(jnp.int32, (1, _LANES), 1)
    out_ref[...] = jnp.where(out_lane == 0, partial, 0.0)


def class_weighted_loss_cb(pred_cb, target, class_weights, smoothing=0.1,
                           block_batch=65536):
    """Fast path: pred_cb is [C, B] (classes on sublanes, batch on lanes).

    target: [B] integer (int8 recommended to minimize HBM traffic).
    Returns mean(loss * class_weights[target]) exactly as the PyTorch module.
    """
    C, B = pred_cb.shape
    if not jnp.issubdtype(target.dtype, jnp.integer):
        target = target.astype(jnp.int32)

    tb, arr_lanes, grid = _choose_tiling(B, block_batch)

    if arr_lanes != B:   # only for batches smaller than one 128-lane tile
        pred_cb = jnp.pad(pred_cb, ((0, 0), (0, arr_lanes - B)))
        target = jnp.pad(target, (0, arr_lanes - B))

    tgt2 = target.reshape(1, arr_lanes)                    # keep narrow int dtype
    cw = class_weights.astype(jnp.float32).reshape(C, 1)

    kernel = functools.partial(
        _class_weighted_loss_kernel,
        num_classes=int(C), smoothing=float(smoothing),
        batch=int(B), tile_b=int(tb))

    cost = pl.CostEstimate(
        flops=12 * B * C,
        transcendentals=B * (C + 1),
        bytes_accessed=int(C * B * pred_cb.dtype.itemsize
                           + B * tgt2.dtype.itemsize
                           + C * 4
                           + grid * _LANES * 4))

    partials = pl.pallas_call(
        kernel,
        out_shape=jax.ShapeDtypeStruct((1, grid * _LANES), jnp.float32),
        grid=(grid,),
        in_specs=[
            pl.BlockSpec((C, tb), lambda i: (0, i)),   # pred   [C, B] tiled on lanes
            pl.BlockSpec((1, tb), lambda i: (0, i)),   # target [1, B]
            pl.BlockSpec((C, 1), lambda i: (0, 0)),    # class_weights (resident)
        ],
        out_specs=pl.BlockSpec((1, _LANES), lambda i: (0, i)),
        compiler_params=pltpu.CompilerParams(
            dimension_semantics=("parallel",),         # batch tiles are independent
            vmem_limit_bytes=48 * 1024 * 1024,         # <= v7x physical 64 MiB
        ),
        cost_estimate=cost,
    )(pred_cb, tgt2, cw)

    # Tiny finishing sum of per-tile partials; divide by the true batch (mean()).
    return jnp.sum(partials) / jnp.float32(B)


def class_weighted_loss(pred, target, class_weights, smoothing=0.1,
                        block_batch=65536):
    """pred: [B, C] logits (f32 or bf16), target: [B] int, class_weights: [C] f32."""
    # TODO(synk): in a real training step emit logits directly as [C, B]
    # (transpose the classifier matmul) and call class_weighted_loss_cb; this
    # standalone transpose costs one extra HBM pass over pred.
    return class_weighted_loss_cb(jnp.transpose(pred, (1, 0)), target,
                                  class_weights, smoothing, block_batch)


def make_class_weights(num_classes, label_counts):
    """Replicates ClassWeightedLoss.__init__ weight construction."""
    max_count = max(label_counts.values())
    w = jnp.zeros((num_classes,), jnp.float32)
    for cls, count in label_counts.items():
        w = w.at[cls].set(max_count / count)
    w = w / jnp.sum(w) * num_classes
    return w


def _reference(pred, target, class_weights, smoothing, num_classes):
    logp = jax.nn.log_softmax(pred.astype(jnp.float32), axis=-1)
    true_dist = jnp.full_like(logp, smoothing / (num_classes - 1))
    true_dist = true_dist.at[jnp.arange(pred.shape[0]), target].set(1.0 - smoothing)
    loss = jnp.sum(-true_dist * logp, axis=-1)
    return jnp.mean(loss * class_weights[target])


if __name__ == "__main__":
    num_classes = 7          # RAF-DB emotion classes
    smoothing = 0.1

    # deterministic synthetic label counts (what the dataset scan would give)
    label_counts = {0: 50, 1: 30, 2: 20, 3: 10, 4: 40, 5: 25, 6: 35}
    class_weights = make_class_weights(num_classes, label_counts)

    key = jax.random.PRNGKey(0)

    # --- primary small-shape check (batch=8, classes=7, f32 pred, int32 tgt) ---
    kp, kt, key = jax.random.split(key, 3)
    batch = 8
    pred = jax.random.normal(kp, (batch, num_classes), dtype=jnp.float32)
    target = jax.random.randint(kt, (batch,), 0, num_classes, dtype=jnp.int32)

    loss = class_weighted_loss(pred, target, class_weights, smoothing)
    loss = jax.block_until_ready(loss)
    ref = _reference(pred, target, class_weights, smoothing, num_classes)
    assert jnp.allclose(loss, ref, rtol=1e-5, atol=1e-5), (loss, ref)

    # --- multi-tile + ragged last tile, bf16 pred + int8 targets
    #     (batch=200 -> tb=128, grid=2, no wrapper padding) ---
    kp2, kt2, key = jax.random.split(key, 3)
    batch2 = 200
    pred2 = jax.random.normal(kp2, (batch2, num_classes),
                              dtype=jnp.float32).astype(jnp.bfloat16)
    target2 = jax.random.randint(kt2, (batch2,), 0, num_classes,
                                 dtype=jnp.int32).astype(jnp.int8)

    loss2 = class_weighted_loss(pred2, target2, class_weights, smoothing)
    loss2 = jax.block_until_ready(loss2)
    ref2 = _reference(pred2, target2, class_weights, smoothing, num_classes)
    assert jnp.allclose(loss2, ref2, rtol=1e-4, atol=1e-4), (loss2, ref2)

    print("KERNEL_OK")
</pallas_src>

<mosaic_0001>
module attributes {stable_mosaic.version = 11 : i64} {
  func.func @_class_weighted_loss_kernel(%arg0: i32, %arg1: memref<7x128xf32, #tpu.memory_space<vmem>>, %arg2: memref<1x128xi32, #tpu.memory_space<vmem>>, %arg3: memref<7x1xf32, #tpu.memory_space<vmem>>, %arg4: memref<1x128xf32, #tpu.memory_space<vmem>>) attributes {dimension_semantics = [#tpu.dimension_semantics<parallel>], iteration_bounds = array<i64: 1>, scalar_prefetch = 0 : i64, scratch_operands = 0 : i64, tpu.core_type = #tpu.core_type<tc>, window_params = [{transform_indices = @transform_0, window_bounds = array<i64: 7, 128>}, {transform_indices = @transform_1, window_bounds = array<i64: 1, 128>}, {pipeline_mode = #tpu.pipeline_mode<synchronous>, transform_indices = @transform_2, window_bounds = array<i64: 7, 1>}, {transform_indices = @transform_3, window_bounds = array<i64: 1, 128>}]} {
    %c0 = arith.constant 0 : index
    %c0_0 = arith.constant 0 : index
    %0 = vector.load %arg1[%c0, %c0_0] : memref<7x128xf32, #tpu.memory_space<vmem>>, vector<7x128xf32>
    %cst = arith.constant dense<0xFF800000> : vector<128xf32>
    %1 = vector.multi_reduction <maximumf>, %0, %cst [0] : vector<7x128xf32> to vector<128xf32>
    %2 = vector.shape_cast %1 : vector<128xf32> to vector<1x128xf32>
    %3 = vector.broadcast %2 : vector<1x128xf32> to vector<7x128xf32>
    %4 = arith.subf %0, %3 : vector<7x128xf32>
    %5 = math.exp %4 : vector<7x128xf32>
    %cst_1 = arith.constant dense<0.000000e+00> : vector<128xf32>
    %6 = vector.multi_reduction <add>, %5, %cst_1 [0] : vector<7x128xf32> to vector<128xf32>
    %7 = vector.shape_cast %6 : vector<128xf32> to vector<1x128xf32>
    %8 = math.log %7 : vector<1x128xf32>
    %c0_2 = arith.constant 0 : index
    %c0_3 = arith.constant 0 : index
    %9 = vector.load %arg2[%c0_2, %c0_3] : memref<1x128xi32, #tpu.memory_space<vmem>>, vector<1x128xi32>
    %10 = tpu.iota {dimensions = array<i32: 0>} : vector<7x128xi32>
    %11 = vector.broadcast %9 : vector<1x128xi32> to vector<7x128xi32>
    %12 = arith.cmpi eq, %10, %11 : vector<7x128xi32>
    %cst_4 = arith.constant 0.000000e+00 : f32
    %13 = vector.broadcast %cst_4 : f32 to vector<7x128xf32>
    %14 = arith.select %12, %4, %13 : vector<7x128xi1>, vector<7x128xf32>
    %cst_5 = arith.constant dense<0.000000e+00> : vector<128xf32>
    %15 = vector.multi_reduction <add>, %14, %cst_5 [0] : vector<7x128xf32> to vector<128xf32>
    %16 = vector.shape_cast %15 : vector<128xf32> to vector<1x128xf32>
    %c0_6 = arith.constant 0 : index
    %c0_7 = arith.constant 0 : index
    %17 = vector.load %arg3[%c0_6, %c0_7] : memref<7x1xf32, #tpu.memory_space<vmem>>, vector<7x1xf32>
    %cst_8 = arith.constant 0.000000e+00 : f32
    %18 = vector.shape_cast %17 : vector<7x1xf32> to vector<7x1xf32>
    %19 = vector.broadcast %18 : vector<7x1xf32> to vector<7x128xf32>
    %20 = vector.broadcast %cst_8 : f32 to vector<7x128xf32>
    %21 = arith.select %12, %19, %20 : vector<7x128xi1>, vector<7x128xf32>
    %cst_9 = arith.constant dense<0.000000e+00> : vector<128xf32>
    %22 = vector.multi_reduction <add>, %21, %cst_9 [0] : vector<7x128xf32> to vector<128xf32>
    %23 = vector.shape_cast %22 : vector<128xf32> to vector<1x128xf32>
    %cst_10 = arith.constant dense<0.000000e+00> : vector<128xf32>
    %24 = vector.multi_reduction <add>, %4, %cst_10 [0] : vector<7x128xf32> to vector<128xf32>
    %25 = vector.shape_cast %24 : vector<128xf32> to vector<1x128xf32>
    %cst_11 = arith.constant 7.000000e+00 : f32
    %26 = vector.broadcast %cst_11 : f32 to vector<1x128xf32>
    %27 = arith.mulf %26, %8 : vector<1x128xf32>
    %28 = arith.subf %25, %27 : vector<1x128xf32>
    %29 = arith.subf %16, %8 : vector<1x128xf32>
    %cst_12 = arith.constant -0.883333325 : f32
    %30 = vector.broadcast %cst_12 : f32 to vector<1x128xf32>
    %31 = arith.mulf %30, %29 : vector<1x128xf32>
    %cst_13 = arith.constant 0.0166666675 : f32
    %32 = vector.broadcast %cst_13 : f32 to vector<1x128xf32>
    %33 = arith.mulf %32, %28 : vector<1x128xf32>
    %34 = arith.subf %31, %33 : vector<1x128xf32>
    %35 = arith.mulf %34, %23 : vector<1x128xf32>
    %36 = tpu.iota {dimensions = array<i32: 1>} : vector<1x128xi32>
    %c128_i32 = arith.constant 128 : i32
    %37 = arith.muli %arg0, %c128_i32 : i32
    %38 = vector.broadcast %37 : i32 to vector<1x128xi32>
    %39 = arith.addi %38, %36 : vector<1x128xi32>
    %c8_i32 = arith.constant 8 : i32
    %40 = vector.broadcast %c8_i32 : i32 to vector<1x128xi32>
    %41 = arith.cmpi slt, %39, %40 : vector<1x128xi32>
    %cst_14 = arith.constant 0.000000e+00 : f32
    %42 = vector.broadcast %cst_14 : f32 to vector<1x128xf32>
    %43 = arith.select %41, %35, %42 : vector<1x128xi1>, vector<1x128xf32>
    %44 = vector.shape_cast %43 : vector<1x128xf32> to vector<1x1x128xf32>
    %cst_15 = arith.constant dense<0.000000e+00> : vector<1xf32>
    %45 = vector.multi_reduction <add>, %44, %cst_15 [1, 2] : vector<1x1x128xf32> to vector<1xf32>
    %46 = vector.shape_cast %45 : vector<1xf32> to vector<1x1x1xf32>
    %47 = vector.extract %46[0, 0, 0] : f32 from vector<1x1x1xf32>
    %48 = tpu.iota {dimensions = array<i32: 1>} : vector<1x128xi32>
    %c0_i32 = arith.constant 0 : i32
    %49 = vector.broadcast %c0_i32 : i32 to vector<1x128xi32>
    %50 = arith.cmpi eq, %48, %49 : vector<1x128xi32>
    %cst_16 = arith.constant 0.000000e+00 : f32
    %51 = vector.broadcast %47 : f32 to vector<1x128xf32>
    %52 = vector.broadcast %cst_16 : f32 to vector<1x128xf32>
    %53 = arith.select %50, %51, %52 : vector<1x128xi1>, vector<1x128xf32>
    %c0_17 = arith.constant 0 : index
    %c0_18 = arith.constant 0 : index
    %54 = vector.load %arg4[%c0_17, %c0_18] : memref<1x128xf32, #tpu.memory_space<vmem>>, vector<1x128xf32>
    tpu.vector_store %arg4[%c0_17, %c0_18], %53 {strides = array<i32>} : memref<1x128xf32, #tpu.memory_space<vmem>>, vector<1x128xf32>,
    return
  }
  func.func @transform_0(%arg0: i32) -> (i32, i32) {
    %c0_i32 = arith.constant 0 : i32
    %c0_i32_0 = arith.constant 0 : i32
    return %c0_i32, %arg0 : i32, i32
  }
  func.func @transform_1(%arg0: i32) -> (i32, i32) {
    %c0_i32 = arith.constant 0 : i32
    %c0_i32_0 = arith.constant 0 : i32
    return %c0_i32, %arg0 : i32, i32
  }
  func.func @transform_2(%arg0: i32) -> (i32, i32) {
    %c0_i32 = arith.constant 0 : i32
    %c0_i32_0 = arith.constant 0 : i32
    %c0_i32_1 = arith.constant 0 : i32
    return %c0_i32, %c0_i32_0 : i32, i32
  }
  func.func @transform_3(%arg0: i32) -> (i32, i32) {
    %c0_i32 = arith.constant 0 : i32
    %c0_i32_0 = arith.constant 0 : i32
    return %c0_i32, %arg0 : i32, i32
  }
}

</mosaic_0001>

<bundles_post_ra>
// kernel: tpu_custom_call.1
= control target key start
LH: loop header
LB: loop body
LE: loop exit
PB: predicated region body
PF: predicated region fallthrough
CT: control target
= control target key end

     0   :  { %v148_v1 = vmov 0   ;;  %s189_s0 = inlined_call_operand.vmem [shape: f32[7,128], index: 0, kind: input, shape index: {}]   ;;  %s190_s1 = inlined_call_operand.vmem [shape: s32[1,128], index: 1, kind: input, shape index: {}]   ;;  %s191_s2 = inlined_call_operand.vmem [shape: f32[7,1], index: 2, kind: input, shape index: {}]   ;;  %s192_s3 = inlined_call_operand.hbm [shape: f32[1,128], index: 3, kind: output, shape index: {}]  }
   0x1   :  { %v52_v0 = vld [vmem:[%s191_s2] sm:$0x7f]  ;;  %121 = vset.pattern.permute.xlu0 %v148_v1 }
   0x2   :  { %8 = vsyncpa [#allocation3], 0  ;;  %55 = vperm.xlu0 %121, %v52_v0   ;;  %v15_v2 = vld [vmem:[%s189_s0] sm:$0x7f]  ;;  %vm16_vm0 = vcmask 1046528   ;;  %v37_v16 = vlaneseq  ;;  %vm87_vm3 = vcmask 1040384  }
   0x3   :  { %v17_v3 = vsel %vm16_vm0, %v15_v2, -inf  ;;  %v116_v19 = vld [vmem:[%s190_s1] ss:$0 sm:$0xff]  ;;  %s149_s1 = smov [#allocation2]  }
   0x4   :  { %v18_v4 = vrot.slane %v17_v3, 4  ;;  %v38_v18 = vshrl.u32 %v37_v16, 7  ;;  %v81_v52 = vand.u32 127, %v37_v16  ;;  %s108_s16 = sshll.u32 %s149_s1, 4  ;;  %s109_s16 = int_to_ptr.vmem [resolvable:$true] %s108_s16 }
   0x5   :  { %s126_s18 = scalar_lea.vmem %s109_s16, 16  ;;  %s130_s19 = scalar_lea.vmem %s109_s16, 32 }
   0x6   :  { %v19_v5 = vmax.f32 %v17_v3, %v18_v4  ;;  %vm43_vm1 = vcmp.eq.s32.totalorder %v38_v18, %v116_v19  ;;  %vm85_vm2 = vcmp.lt.s32.totalorder %v81_v52, 8  ;;  %vm98_vm4 = vcmp.eq.s32.totalorder %v81_v52, 0  ;;  %p127_p0 = scmp.ne.s32.totalorder %s109_s16, %s126_s18  ;;  %p131_p1 = scmp.lt.s32.totalorder %s109_s16, %s109_s16 }
   0x7   :  { %p132_p2 = scmp.lt.s32.totalorder %s130_s19, %s126_s18 }
   0x8   :  { %v20_v6 = vrot.slane %v19_v5, 2 }
   0x9   :  { %p133_p3 = por %p132_p2, %p131_p1 }
   0xa   :  { %v21_v7 = vmax.f32 %v19_v5, %v20_v6 }
   0xb   :  { %p134_p4 = pnand %p133_p3, %p127_p0 }
   0xc   :  { %v22_v8 = vrot.slane %v21_v7, 1 }
   0xe   :  { %v23_v9 = vmax.f32 %v21_v7, %v22_v8 }
  0x10   :  { %v24_v10 = vsub.f32 %v15_v2, %v23_v9 }
  0x12   :  { %v25_v11 = vmul.f32 1.442695, %v24_v10  ;;  %v44_v22 = vsel %vm43_vm1, %v24_v10, 0.0  ;;  %v66_v25 = vsel %vm16_vm0, %v24_v10, 0.0 }
  0x13   :  { %v45_v24 = vsel %vm16_vm0, %v44_v22, 0.0  ;;  %v67_v27 = vrot.slane %v66_v25, 4 }
  0x14   :  { %122 = vpow2.f32 %v25_v11  ;;  %v46_v26 = vrot.slane %v45_v24, 4 }
  0x15   :  { %v68_v29 = vadd.f32 %v67_v27, %v66_v25 }
  0x16   :  { %v47_v28 = vadd.f32 %v46_v26, %v45_v24 }
  0x17   :  { %v69_v31 = vrot.slane %v68_v29, 2 }
  0x18   :  { %v48_v30 = vrot.slane %v47_v28, 2 }
  0x19   :  { %v70_v33 = vadd.f32 %v69_v31, %v68_v29 }
  0x1a   :  { %v49_v32 = vadd.f32 %v48_v30, %v47_v28 }
  0x1b   :  { %v71_v37 = vrot.slane %v70_v33, 1 }
  0x1c   :  { %v50_v35 = vrot.slane %v49_v32, 1 }
  0x1d   :  { %v72_v39 = vadd.f32 %v71_v37, %v70_v33 }
  0x1e   :  { %v51_v38 = vadd.f32 %v50_v35, %v49_v32 }
  0x21   :  { %v123_v12 = vpop.eup %122 }
  0x22   :  { %v27_v13 = vsel %vm16_vm0, %v123_v12, 0.0 }
  0x23   :  { %v28_v14 = vrot.slane %v27_v13, 4 }
  0x25   :  { %v29_v15 = vadd.f32 %v28_v14, %v27_v13 }
  0x27   :  { %v30_v17 = vrot.slane %v29_v15, 2 }
  0x29   :  { %v31_v20 = vadd.f32 %v30_v17, %v29_v15 }
  0x2b   :  { %v32_v21 = vrot.slane %v31_v20, 1 }
  0x2d   :  { %v33_v23 = vadd.f32 %v32_v21, %v31_v20 }
  0x2f   :  { %124 = vlog2.f32 %v33_v23 }
  0x3c   :  { %v125_v34 = vpop.eup %124 }
  0x3d   :  { %v35_v36 = vmul.f32 0.6931472, %v125_v34 }
  0x3f   :  { %v73_v40 = vmul.f32 7.0, %v35_v36  ;;  %v75_v46 = vsub.f32 %v51_v38, %v35_v36 }
  0x41   :  { %v74_v45 = vsub.f32 %v72_v39, %v73_v40  ;;  %v76_v49 = vmul.f32 -0.8833333, %v75_v46 }
  0x43   :  { %v77_v50 = vmul.f32 0.016666668, %v74_v45 }
  0x45   :  { %v78_v54 = vsub.f32 %v76_v49, %v77_v50 }
  0x7d   :  { %v56_v41 = vpop.permute.xlu0 %55 }
  0x7e   :  { %v58_v42 = vsel %vm43_vm1, %v56_v41, 0.0 }
  0x7f   :  { %v59_v43 = vsel %vm16_vm0, %v58_v42, 0.0 }
  0x80   :  { %v60_v44 = vrot.slane %v59_v43, 4 }
  0x82   :  { %v61_v47 = vadd.f32 %v60_v44, %v59_v43 }
  0x84   :  { %v62_v48 = vrot.slane %v61_v47, 2 }
  0x86   :  { %v63_v51 = vadd.f32 %v62_v48, %v61_v47 }
  0x88   :  { %v64_v53 = vrot.slane %v63_v51, 1 }
  0x8a   :  { %v65_v55 = vadd.f32 %v64_v53, %v63_v51 }
  0x8c   :  { %v79_v56 = vmul.f32 %v78_v54, %v65_v55 }
  0x8e   :  { %v86_v57 = vsel %vm85_vm2, %v79_v56, 0.0 }
  0x8f   :  { %v88_v58 = vsel %vm87_vm3, %v86_v57, 0.0 }
  0x90   :  { %89 = vadd.xlane.f32.xlu0 %v88_v58 }
 0x119   :  { %v90_v59 = vpop.xlane.xlu0 %89 }
 0x11a   :  { %v91_v60 = vrot.slane %v90_v59, 4 }
 0x11c   :  { %v92_v61 = vadd.f32 %v91_v60, %v90_v59 }
 0x11e   :  { %v93_v62 = vrot.slane %v92_v61, 2 }
 0x120   :  { %v94_v63 = vadd.f32 %v93_v62, %v92_v61 }
 0x122   :  { %v95_v0 = vrot.slane %v94_v63, 1 }
 0x124   :  { %v96_v1 = vadd.f32 %v95_v0, %v94_v63 }
 0x126   :  { %117 = vpush %v96_v1 }
 0x157   :  { %s118_s17 = spop %117 }
 0x158   :  { %v99_v2 = vstv %s118_s17 }
 0x159   :  { %v100_v3 = vsel %vm98_vm4, %v99_v2, 0.0 }
 0x15a   :  { %101 = vst [vmem:[#allocation2] sm:$0x1] %v100_v3 }
 0x15b   :  { %137 = shalt.err (!%p134_p4)
}
 0x15c   :  { %111 = dma.vmem_to_hbm [thread:$0]  %s109_s16, 16, %s192_s3, [#allocation3]  }
 0x15d   :  { %146 = dma.done.wait [#allocation3], 16  }
 0x15e   :  { %147 = vsyncadd [#allocation3], 4294967280 }
 0x15f   :  { %115 = vsyncpa [#allocation3], 1 }

</bundles_post_ra>
